<compile_context>
chip_gen: v6e
topology: v6e:2x2x1
jax: 0.10.0
libtpu: 0.0.40
codegen_flags: <defaults>
</compile_context>

<pallas_src>
import math

import jax
import jax.numpy as jnp
from jax.experimental import pallas as pl
from jax.experimental.pallas import tpu as pltpu

NEG_SLOPE = 0.01  # torch.nn.LeakyReLU default negative_slope


# ----------------------------------------------------------------------------- kernels
def ffn_kernel_resident(x_ref, w1t_ref, b1_ref, w2t_ref, b2_ref, o_ref):
    """Whole FFN for one row tile; W1^T / W2^T fully resident in VMEM (no reduction axis)."""
    h = jnp.dot(x_ref[...], w1t_ref[...], preferred_element_type=jnp.float32)
    h = h + b1_ref[...]                        # f32 bias
    h = jnp.maximum(h, NEG_SLOPE * h)          # LeakyReLU (exact for 0 < slope < 1)
    out = jnp.dot(h.astype(w2t_ref.dtype), w2t_ref[...],
                  preferred_element_type=jnp.float32)
    o_ref[...] = (out + b2_ref[...]).astype(o_ref.dtype)


def ffn_kernel_tiled_f32out(x_ref, w1t_ref, b1_ref, w2t_ref, b2_ref, o_ref):
    """Hidden-tiled reduction; the f32 output block doubles as the accumulator (no scratch)."""
    k = pl.program_id(1)

    @pl.when(k == 0)
    def _():
        o_ref[...] = jnp.zeros_like(o_ref)

    h = jnp.dot(x_ref[...], w1t_ref[...], preferred_element_type=jnp.float32)
    h = h + b1_ref[...]
    h = jnp.maximum(h, NEG_SLOPE * h)
    o_ref[...] += jnp.dot(h.astype(w2t_ref.dtype), w2t_ref[...],
                          preferred_element_type=jnp.float32)

    @pl.when(k == pl.num_programs(1) - 1)
    def _():
        o_ref[...] += b2_ref[...]


def ffn_kernel_tiled(x_ref, w1t_ref, b1_ref, w2t_ref, b2_ref, o_ref, acc_ref):
    """Hidden-tiled reduction with an f32 VMEM accumulator (for non-f32 output dtypes)."""
    k = pl.program_id(1)

    @pl.when(k == 0)
    def _():
        acc_ref[...] = jnp.zeros_like(acc_ref)

    h = jnp.dot(x_ref[...], w1t_ref[...], preferred_element_type=jnp.float32)
    h = h + b1_ref[...]
    h = jnp.maximum(h, NEG_SLOPE * h)
    acc_ref[...] += jnp.dot(h.astype(w2t_ref.dtype), w2t_ref[...],
                            preferred_element_type=jnp.float32)

    @pl.when(k == pl.num_programs(1) - 1)
    def _():
        o_ref[...] = (acc_ref[...] + b2_ref[...]).astype(o_ref.dtype)


# ----------------------------------------------------------------------------- planning
def _round_up(x, n):
    return ((x + n - 1) // n) * n


def _physical_vmem_bytes():
    try:
        return int(pltpu.get_tpu_info().vmem_capacity_bytes)
    except Exception:
        return 64 << 20  # conservative fallback (v7x per-TensorCore VMEM)


def _tm_candidates(m, *, force_two_tiles):
    """Descending row-tile candidates (multiples of 8, capped at 1024)."""
    if m <= 8:
        return [m]
    cap = _round_up(m, 8)
    if force_two_tiles and m >= 16:
        # >= 2 programs on the parallel axis so both v7x TensorCores get work.
        cap = min(cap, _round_up(pl.cdiv(m, 2), 8))
    cap = min(cap, 1024)
    cands = []
    t = cap
    while True:
        cands.append(t)
        if t <= 8:
            break
        nt = _round_up(max(t // 2, 8), 8)
        if nt >= t:
            break
        t = nt
    return cands


def _plan_tiles(m, dim_p, hidden_p, in_itemsize, out_itemsize, budget):
    """Pick (mode, tm, th, vmem_bytes_needed) under a VMEM byte budget."""
    bias_bytes = 2 * (hidden_p + dim_p) * 4

    def resident_bytes(tm):
        w = 2 * 2 * dim_p * hidden_p * in_itemsize            # W1^T + W2^T, double-buffered
        io = 2 * tm * dim_p * (in_itemsize + out_itemsize)    # x + out tiles, double-buffered
        h = tm * hidden_p * (4 + in_itemsize)                 # f32 h + cast copy for 2nd dot
        return w + io + h + bias_bytes

    def tiled_bytes(tm, th):
        w = 2 * 2 * dim_p * th * in_itemsize                  # W1^T + W2^T hidden tiles
        io = 2 * tm * dim_p * (in_itemsize + out_itemsize)
        acc = tm * dim_p * 4                                  # accumulator (scratch or o_ref)
        h = tm * th * (4 + in_itemsize)
        return w + io + acc + h + bias_bytes

    # Resident-weight mode: no k axis, weights DMA'd once for the whole grid.
    for tm in _tm_candidates(m, force_two_tiles=True):
        need = resident_bytes(tm)
        if need <= budget:
            return "resident", tm, hidden_p, need

    # Hidden-tiled mode: maximize tm first (weights are re-streamed once per row tile),
    # then the largest th that divides hidden_p (fewer k steps -> fewer accumulator RMWs,
    # which matters most on v5e's single vector-store slot).
    th_cands = [d for d in range(hidden_p, 0, -128) if hidden_p % d == 0]
    for tm in _tm_candidates(m, force_two_tiles=False):
        for th in th_cands:
            need = tiled_bytes(tm, th)
            if need <= budget:
                return "tiled", tm, th, need

    # Nothing fits the budget: smallest legal tiles (compiler may spill, but it runs).
    tm = _tm_candidates(m, force_two_tiles=False)[-1]
    return "tiled", tm, 128, tiled_bytes(tm, 128)


# ----------------------------------------------------------------------------- wrapper
def prepare_ffn_params(w1, b1, w2, b2, *, compute_dtype=jnp.bfloat16):
    """One-time weight prep: transpose, cast, zero-pad feature/hidden axes to multiples of 128.

    w1: (hidden, dim), b1: (hidden,), w2: (dim, hidden), b2: (dim,)  [PyTorch Linear layout].
    Zero padding is exact: padded hidden units produce h = LeakyReLU(0 + 0) = 0 and contribute
    nothing to the second matmul; padded feature columns are sliced off the output.
    """
    hidden, dim = w1.shape
    assert w2.shape == (dim, hidden) and b1.shape == (hidden,) and b2.shape == (dim,)
    dim_p = _round_up(dim, 128)
    hidden_p = _round_up(hidden, 128)

    w1t = jnp.zeros((dim_p, hidden_p), compute_dtype).at[:dim, :hidden].set(
        w1.T.astype(compute_dtype))
    w2t = jnp.zeros((hidden_p, dim_p), compute_dtype).at[:hidden, :dim].set(
        w2.T.astype(compute_dtype))
    b1p = jnp.zeros((1, hidden_p), jnp.float32).at[0, :hidden].set(b1.astype(jnp.float32))
    b2p = jnp.zeros((1, dim_p), jnp.float32).at[0, :dim].set(b2.astype(jnp.float32))

    return dict(w1t=w1t, b1=b1p, w2t=w2t, b2=b2p,
                dim=dim, hidden=hidden, dim_p=dim_p, hidden_p=hidden_p,
                compute_dtype=compute_dtype)


def feed_forward(x, params, *, vmem_budget_bytes=None):
    """Fused FFN forward: x (..., dim) -> (..., dim). `params` from prepare_ffn_params()."""
    dim, dim_p, hidden_p = params["dim"], params["dim_p"], params["hidden_p"]
    compute_dtype = params["compute_dtype"]
    assert x.shape[-1] == dim, (x.shape, dim)

    lead = x.shape[:-1]
    m = math.prod(lead) if lead else 1
    out_dtype = x.dtype

    x2d = x.reshape(m, dim).astype(compute_dtype)
    if dim_p != dim:
        # Lane-dense features: zero-pad to a multiple of 128 (padded cols sliced off below).
        x2d = jnp.pad(x2d, ((0, 0), (0, dim_p - dim)))

    in_itemsize = jnp.dtype(compute_dtype).itemsize
    out_itemsize = jnp.dtype(out_dtype).itemsize

    phys = _physical_vmem_bytes()
    budget = int(phys * 0.75) if vmem_budget_bytes is None else int(vmem_budget_bytes)
    mode, tm, th, needed = _plan_tiles(m, dim_p, hidden_p, in_itemsize, out_itemsize, budget)

    vmem_limit = int(min(int(phys * 0.85),
                         max(32 << 20, int(needed * 1.3) + (2 << 20))))

    if mode == "resident":
        grid = (pl.cdiv(m, tm),)
        in_specs = [
            pl.BlockSpec((tm, dim_p), lambda i: (i, 0)),          # x row tile
            pl.BlockSpec((dim_p, hidden_p), lambda i: (0, 0)),    # W1^T, resident
            pl.BlockSpec((1, hidden_p), lambda i: (0, 0)),        # b1, resident
            pl.BlockSpec((hidden_p, dim_p), lambda i: (0, 0)),    # W2^T, resident
            pl.BlockSpec((1, dim_p), lambda i: (0, 0)),           # b2, resident
        ]
        out_specs = pl.BlockSpec((tm, dim_p), lambda i: (i, 0))
        scratch = []
        kernel = ffn_kernel_resident
        dim_sem = ("parallel",)
    else:
        grid = (pl.cdiv(m, tm), hidden_p // th)                   # reduction axis last
        in_specs = [
            pl.BlockSpec((tm, dim_p), lambda i, k: (i, 0)),       # x row tile
            pl.BlockSpec((dim_p, th), lambda i, k: (0, k)),       # W1^T hidden tile
            pl.BlockSpec((1, th), lambda i, k: (0, k)),           # b1 hidden tile
            pl.BlockSpec((th, dim_p), lambda i, k: (k, 0)),       # W2^T hidden tile
            pl.BlockSpec((1, dim_p), lambda i, k: (0, 0)),        # b2, resident
        ]
        out_specs = pl.BlockSpec((tm, dim_p), lambda i, k: (i, 0))  # resident across k
        if out_dtype == jnp.float32:
            scratch = []                                          # o_ref doubles as accumulator
            kernel = ffn_kernel_tiled_f32out
        else:
            scratch = [pltpu.VMEM((tm, dim_p), jnp.float32)]
            kernel = ffn_kernel_tiled
        dim_sem = ("parallel", "arbitrary")

    out2d = pl.pallas_call(
        kernel,
        out_shape=jax.ShapeDtypeStruct((m, dim_p), out_dtype),
        grid_spec=pltpu.PrefetchScalarGridSpec(
            num_scalar_prefetch=0,
            grid=grid,
            in_specs=in_specs,
            out_specs=out_specs,
            scratch_shapes=scratch,
        ),
        compiler_params=pltpu.CompilerParams(
            dimension_semantics=dim_sem,
            vmem_limit_bytes=vmem_limit,
        ),
    )(x2d, params["w1t"], params["b1"], params["w2t"], params["b2"])

    if dim_p != dim:
        out2d = out2d[:, :dim]
    return out2d.reshape(*lead, dim)


# ----------------------------------------------------------------------------- demo / checks
if __name__ == "__main__":
    def _torch_ref(x, w1, b1, w2, b2):
        h = x.astype(jnp.float32) @ w1.T + b1
        h = jnp.where(h >= 0, h, NEG_SLOPE * h)
        return h @ w2.T + b2

    key = jax.random.PRNGKey(0)
    kx, kw1, kb1, kw2, kb2, kw1b, kb1b, kw2b, kb2b = jax.random.split(key, 9)

    # Shapes consistent with FeedForward(dim, mult): x = (batch, seq, dim), hidden = dim*mult.
    batch, seq, dim, mult = 2, 8, 32, 4
    hidden = dim * mult

    x = jax.random.normal(kx, (batch, seq, dim), dtype=jnp.float32)
    w1 = jax.random.normal(kw1, (hidden, dim), dtype=jnp.float32) * 0.05   # (out, in) layout
    b1 = jax.random.normal(kb1, (hidden,), dtype=jnp.float32) * 0.05
    w2 = jax.random.normal(kw2, (dim, hidden), dtype=jnp.float32) * 0.05
    b2 = jax.random.normal(kb2, (dim,), dtype=jnp.float32) * 0.05
    ref = _torch_ref(x, w1, b1, w2, b2)

    # 1) Default inference path: bf16 matmul operands, resident weights (no reduction axis).
    params_bf16 = prepare_ffn_params(w1, b1, w2, b2, compute_dtype=jnp.bfloat16)
    out = jax.block_until_ready(feed_forward(x, params_bf16))
    assert out.shape == x.shape and out.dtype == x.dtype, (out.shape, out.dtype)
    assert jnp.allclose(out, ref, atol=5e-2, rtol=5e-2), float(jnp.max(jnp.abs(out - ref)))

    # 2) f32 operands: strict check of the resident kernel.
    params_f32 = prepare_ffn_params(w1, b1, w2, b2, compute_dtype=jnp.float32)
    out_f32 = jax.block_until_ready(feed_forward(x, params_f32))
    assert jnp.allclose(out_f32, ref, atol=1e-5, rtol=1e-5), float(
        jnp.max(jnp.abs(out_f32 - ref)))

    # 3) Hidden-tiled reduction path (forced via a tiny artificial VMEM budget), multiple
    #    k steps, f32 output accumulating directly into o_ref (no scratch).
    hidden_b = dim * 8
    w1b = jax.random.normal(kw1b, (hidden_b, dim), dtype=jnp.float32) * 0.05
    b1b = jax.random.normal(kb1b, (hidden_b,), dtype=jnp.float32) * 0.05
    w2b = jax.random.normal(kw2b, (dim, hidden_b), dtype=jnp.float32) * 0.05
    b2b = jax.random.normal(kb2b, (dim,), dtype=jnp.float32) * 0.05
    ref_b = _torch_ref(x, w1b, b1b, w2b, b2b)

    params_b_f32 = prepare_ffn_params(w1b, b1b, w2b, b2b, compute_dtype=jnp.float32)
    out_b = jax.block_until_ready(
        feed_forward(x, params_b_f32, vmem_budget_bytes=200 << 10))
    assert jnp.allclose(out_b, ref_b, atol=1e-5, rtol=1e-5), float(
        jnp.max(jnp.abs(out_b - ref_b)))

    # 4) Hidden-tiled path with a non-f32 output dtype (exercises the f32 scratch accumulator).
    params_b_bf16 = prepare_ffn_params(w1b, b1b, w2b, b2b, compute_dtype=jnp.bfloat16)
    out_b_bf16 = jax.block_until_ready(
        feed_forward(x.astype(jnp.bfloat16), params_b_bf16, vmem_budget_bytes=200 << 10))
    assert out_b_bf16.dtype == jnp.bfloat16
    assert jnp.allclose(out_b_bf16.astype(jnp.float32), ref_b, atol=6e-2, rtol=6e-2), float(
        jnp.max(jnp.abs(out_b_bf16.astype(jnp.float32) - ref_b)))

    # TODO(synk): training-mode Dropout (p > 0) would need pltpu.prng_seed/prng_random_bits;
    # the module's default p=0.0 (and eval mode) is the identity, so it is omitted here.
    print("KERNEL_OK")
</pallas_src>

<mosaic_0001>
module attributes {stable_mosaic.version = 11 : i64} {
  func.func @ffn_kernel_resident(%arg0: i32, %arg1: memref<8x128xbf16, #tpu.memory_space<vmem>>, %arg2: memref<128x128xbf16, #tpu.memory_space<vmem>>, %arg3: memref<1x128xf32, #tpu.memory_space<vmem>>, %arg4: memref<128x128xbf16, #tpu.memory_space<vmem>>, %arg5: memref<1x128xf32, #tpu.memory_space<vmem>>, %arg6: memref<8x128xf32, #tpu.memory_space<vmem>>) attributes {dimension_semantics = [#tpu.dimension_semantics<parallel>], iteration_bounds = array<i64: 2>, scalar_prefetch = 0 : i64, scratch_operands = 0 : i64, tpu.core_type = #tpu.core_type<tc>, window_params = [{transform_indices = @transform_0, window_bounds = array<i64: 8, 128>}, {pipeline_mode = #tpu.pipeline_mode<synchronous>, transform_indices = @transform_1, window_bounds = array<i64: 128, 128>}, {pipeline_mode = #tpu.pipeline_mode<synchronous>, transform_indices = @transform_2, window_bounds = array<i64: 1, 128>}, {pipeline_mode = #tpu.pipeline_mode<synchronous>, transform_indices = @transform_3, window_bounds = array<i64: 128, 128>}, {pipeline_mode = #tpu.pipeline_mode<synchronous>, transform_indices = @transform_4, window_bounds = array<i64: 1, 128>}, {transform_indices = @transform_5, window_bounds = array<i64: 8, 128>}]} {
    %c0 = arith.constant 0 : index
    %c0_0 = arith.constant 0 : index
    %0 = vector.load %arg1[%c0, %c0_0] : memref<8x128xbf16, #tpu.memory_space<vmem>>, vector<8x128xbf16>
    %c0_1 = arith.constant 0 : index
    %c0_2 = arith.constant 0 : index
    %1 = vector.load %arg2[%c0_1, %c0_2] : memref<128x128xbf16, #tpu.memory_space<vmem>>, vector<128x128xbf16>
    %cst = arith.constant dense<0.000000e+00> : vector<8x128xf32>
    %2 = tpu.matmul %0, %1, %cst {dimension_numbers = #tpu.dot_dimension_numbers<[1], [0], [0], [1], [0, 0, 1, 1], [], []>} : vector<8x128xbf16>, vector<128x128xbf16>, vector<8x128xf32> -> vector<8x128xf32>
    %c0_3 = arith.constant 0 : index
    %c0_4 = arith.constant 0 : index
    %3 = vector.load %arg3[%c0_3, %c0_4] : memref<1x128xf32, #tpu.memory_space<vmem>>, vector<1x128xf32>
    %4 = vector.broadcast %3 : vector<1x128xf32> to vector<8x128xf32>
    %5 = arith.addf %2, %4 : vector<8x128xf32>
    %cst_5 = arith.constant 0.00999999977 : f32
    %6 = vector.broadcast %cst_5 : f32 to vector<8x128xf32>
    %7 = arith.mulf %6, %5 : vector<8x128xf32>
    %8 = arith.maximumf %5, %7 : vector<8x128xf32>
    %9 = arith.truncf %8 : vector<8x128xf32> to vector<8x128xbf16>
    %c0_6 = arith.constant 0 : index
    %c0_7 = arith.constant 0 : index
    %10 = vector.load %arg4[%c0_6, %c0_7] : memref<128x128xbf16, #tpu.memory_space<vmem>>, vector<128x128xbf16>
    %cst_8 = arith.constant dense<0.000000e+00> : vector<8x128xf32>
    %11 = tpu.matmul %9, %10, %cst_8 {dimension_numbers = #tpu.dot_dimension_numbers<[1], [0], [0], [1], [0, 0, 1, 1], [], []>} : vector<8x128xbf16>, vector<128x128xbf16>, vector<8x128xf32> -> vector<8x128xf32>
    %c0_9 = arith.constant 0 : index
    %c0_10 = arith.constant 0 : index
    %12 = vector.load %arg5[%c0_9, %c0_10] : memref<1x128xf32, #tpu.memory_space<vmem>>, vector<1x128xf32>
    %13 = vector.broadcast %12 : vector<1x128xf32> to vector<8x128xf32>
    %14 = arith.addf %11, %13 : vector<8x128xf32>
    %c0_11 = arith.constant 0 : index
    %c0_12 = arith.constant 0 : index
    %15 = vector.load %arg6[%c0_11, %c0_12] : memref<8x128xf32, #tpu.memory_space<vmem>>, vector<8x128xf32>
    tpu.vector_store %arg6[%c0_11, %c0_12], %14 {strides = array<i32>} : memref<8x128xf32, #tpu.memory_space<vmem>>, vector<8x128xf32>,
    return
  }
  func.func @transform_0(%arg0: i32) -> (i32, i32) {
    %c0_i32 = arith.constant 0 : i32
    %c0_i32_0 = arith.constant 0 : i32
    return %arg0, %c0_i32 : i32, i32
  }
  func.func @transform_1(%arg0: i32) -> (i32, i32) {
    %c0_i32 = arith.constant 0 : i32
    %c0_i32_0 = arith.constant 0 : i32
    %c0_i32_1 = arith.constant 0 : i32
    return %c0_i32, %c0_i32_0 : i32, i32
  }
  func.func @transform_2(%arg0: i32) -> (i32, i32) {
    %c0_i32 = arith.constant 0 : i32
    %c0_i32_0 = arith.constant 0 : i32
    %c0_i32_1 = arith.constant 0 : i32
    return %c0_i32, %c0_i32_0 : i32, i32
  }
  func.func @transform_3(%arg0: i32) -> (i32, i32) {
    %c0_i32 = arith.constant 0 : i32
    %c0_i32_0 = arith.constant 0 : i32
    %c0_i32_1 = arith.constant 0 : i32
    return %c0_i32, %c0_i32_0 : i32, i32
  }
  func.func @transform_4(%arg0: i32) -> (i32, i32) {
    %c0_i32 = arith.constant 0 : i32
    %c0_i32_0 = arith.constant 0 : i32
    %c0_i32_1 = arith.constant 0 : i32
    return %c0_i32, %c0_i32_0 : i32, i32
  }
  func.func @transform_5(%arg0: i32) -> (i32, i32) {
    %c0_i32 = arith.constant 0 : i32
    %c0_i32_0 = arith.constant 0 : i32
    return %arg0, %c0_i32 : i32, i32
  }
}

</mosaic_0001>

<bundles_post_ra>
// kernel: tpu_custom_call.1
= control target key start
LH: loop header
LB: loop body
LE: loop exit
PB: predicated region body
PF: predicated region fallthrough
CT: control target
= control target key end

     0   :  { %10 = vsyncpa [#allocation3], 0  ;;  %s1154_s0 = inlined_call_operand.hbm [shape: bf16[16,128], index: 0, kind: input, shape index: {}]   ;;  %s1155_s1 = inlined_call_operand.hbm [shape: bf16[128,128], index: 1, kind: input, shape index: {}]   ;;  %s1156_s2 = inlined_call_operand.vmem [shape: f32[1,128], index: 2, kind: input, shape index: {}]   ;;  %s1157_s3 = inlined_call_operand.hbm [shape: bf16[128,128], index: 3, kind: input, shape index: {}]   ;;  %s1158_s4 = inlined_call_operand.vmem [shape: f32[1,128], index: 4, kind: input, shape index: {}]   ;;  %s1159_s5 = inlined_call_operand.hbm [shape: f32[16,128], index: 5, kind: output, shape index: {}]  }
   0x1   :  { %12 = vsyncpa [#allocation3 + $0x1], 0 }
   0x2   :  { %13 = vsyncpa [#allocation6], 0 }
   0x3   :  { %14 = vsyncpa [#allocation4], 0 }
   0x4   :  { %16 = vsyncpa [#allocation4 + $0x1], 0  ;;  %s967_s18 = smov 0   ;;  %s969_s19 = smov 0  }
   0x5   :  { %s971_s20 = smov 0   ;;  %s973_s21 = smov 0  }
   0x6 LB: > { %s988_s22 = sadd.s32 4294967295, %s927_s21   ;;  %s600_s23 = sadd.s32 4294967294, %s927_s21   ;;  %s927_s21 = sphi %s973_s21, %s1181_s21   ;;  %s923_s20 = sphi %s971_s20, %s1180_s20   ;;  %s919_s19 = sphi %s969_s19, %s1179_s19   ;;  %s915_s18 = sphi %s967_s18, %s1178_s18  }
   0x7   : > { %p42_p0 = scmp.ne.s32.totalorder %s919_s19, %s915_s18  ;;  %p1160_p1 = scmp.eq.s32.totalorder %s988_s22, 0 }
   0x8   : > { %p156_p3 = scmp.eq.s32.totalorder %s600_s23, 1  ;;  %p601_p5 = scmp.ge.s32.totalorder %s927_s21, 1 }
   0x9   : > { %p997_p4 = por %p1160_p1, %p42_p0  ;;  %p163_p7 = scmp.lt.s32.totalorder %s927_s21, 3 }
   0xa   : > { %p1002_p6 = por %p156_p3, %p42_p0  ;;  %s929_s27 = smov [#allocation5]  }
   0xb   : > { %s1164_s24 = scalar_select %p997_p4, 1, 0 }
   0xc   : > { %s1165_s25 = scalar_select %p1002_p6, 1, 0 }
   0xd   : > { %p1007_p8 = pnand %p601_p5, %p163_p7  ;;  %s175_s28 = sshll.u32 %s929_s27, 4  ;;  %s176_s28 = int_to_ptr.vmem [resolvable:$true] %s175_s28 }
   0xe   : > { %s930_s30 = smov [#allocation7]   ;;  %s790_s7 = scalar_lea.vmem %s176_s28, 1024 }
   0xf   : > { %s1166_s26 = scalar_select %p1007_p8, 1, 0 }
  0x10   : > { %p704_p9 = pneg %p1007_p8  ;;  %s191_s6 = sshll.u32 %s930_s30, 4  ;;  %s192_s6 = int_to_ptr.vmem [resolvable:$true] %s191_s6 }
  0x11   : > { %p791_p13 = scmp.ne.s32.totalorder %s176_s28, %s790_s7  ;;  %p798_p5 = scmp.lt.s32.totalorder %s176_s28, %s176_s28 }
  0x12   : > { %p1016_p11 = pnand %p704_p9, %p1160_p1  ;;  %p799_p7 = scmp.lt.s32.totalorder %s790_s7, %s790_s7 }
  0x14   : > { %p781_p12 = pneg %p1016_p11  ;;  %p800_p10 = por %p799_p7, %p798_p5 }
  0x16   : > { %p793_p0 = pnand %p791_p13, %p781_p12 }
  0x18   : > { %p794_p3 = pneg %p793_p0 }
  0x1a   : > { %p801_p9 = pnand %p800_p10, %p794_p3 }
  0x1c   : > { %804 = shalt.err (!%p801_p9)
}
  0x1d   : > { %s931_s8 = smov 64   ;;  %s932_s9 = smov 4  }
  0x1e   : > { %707 = dma.hbm_to_vmem [thread:$0]  (!%p1016_p11), %s1155_s1, 1024, %s176_s28, [#allocation6], %s931_s8, %s931_s8, %s932_s9  }
  0x1f   : > { %s816_s12 = scalar_lea.vmem %s192_s6, 1024  ;;  %p824_p2 = scmp.lt.s32.totalorder %s192_s6, %s192_s6 }
  0x20   : > { %p817_p1 = scmp.ne.s32.totalorder %s192_s6, %s816_s12  ;;  %p825_p6 = scmp.lt.s32.totalorder %s816_s12, %s816_s12 }
  0x22   : > { %p819_p13 = pnand %p817_p1, %p781_p12  ;;  %p826_p5 = por %p825_p6, %p824_p2 }
  0x24   : > { %p820_p0 = pneg %p819_p13 }
  0x26   : > { %p827_p10 = pnand %p826_p5, %p820_p0 }
  0x28   : > { %830 = shalt.err (!%p827_p10)
}
  0x29   : > { %710 = dma.hbm_to_vmem [thread:$0]  (!%p1016_p11), %s1157_s3, 1024, %s192_s6, [#allocation6], %s931_s8, %s931_s8, %s932_s9  }
  0x2a   : > { %s1039_s15 = sadd.s32 1, %s927_s21   ;;  %s29_s16 = sadd.s32 1, %s923_s20 }
  0x2b   : > { %s26_s17 = ssub.s32 %s927_s21, %s1039_s15  ;;  %p36_p1 = scmp.ne.s32.totalorder %s923_s20, %s919_s19 }
  0x2c   : > { %p27_p2 = scmp.eq.s32.totalorder %s26_s17, 0  ;;  %p37_p6 = scmp.eq.s32.totalorder %s927_s21, 0 }
  0x2d   : > { %p1168_p12 = scmp.eq.s32.totalorder %s988_s22, 1  ;;  %p721_p7 = scmp.lt.s32.totalorder %s927_s21, 2 }
  0x2e   : > { %s1055_s27 = scalar_select %p27_p2, %s923_s20, %s29_s16  }
  0x2f   : > { %p1049_p3 = por %p1168_p12, %p36_p1  ;;  %p38_p9 = por %p37_p6, %p36_p1 }
  0x30   : > { %s208_s28 = sand.u32 1, %s923_s20   ;;  %s606_s30 = sshll.u32 %s927_s21, 6 }
  0x31   : > { %s1169_s23 = scalar_select %p1049_p3, 1, 0 }
  0x32   : > { %s605_s29 = sshll.u32 %s208_s28, 2  ;;  %s1062_s8 = scalar_lea.hbm %s1154_s0, %s606_s30 }
  0x33   : > { %s212_s9 = scalar_lea.vmem [#allocation2], %s605_s29  ;;  %p1064_p11 = pnand %p721_p7, %p38_p9 }
  0x34   : > { %s219_s10 = sshll.u32 %s212_s9, 4  ;;  %s209_s12 = scalar_lea.sflag [#allocation3], %s208_s28  ;;  %s220_s10 = int_to_ptr.vmem [resolvable:$true] %s219_s10 }
  0x35   : > { %s831_s13 = scalar_lea.hbm %s1062_s8, 64  ;;  %p833_p0 = pneg %p1064_p11 }
  0x36   : > { %p832_p13 = scmp.ne.s32.totalorder %s1062_s8, %s831_s13  ;;  %s836_s17 = scalar_lea.hbm %s1154_s0, 128 }
  0x37   : > { %p837_p1 = scmp.lt.s32.totalorder %s1062_s8, %s1154_s0  ;;  %p838_p2 = scmp.lt.s32.totalorder %s836_s17, %s831_s13 }
  0x38   : > { %p834_p5 = pnand %p833_p0, %p832_p13 }
  0x39   : > { %p839_p6 = por %p838_p2, %p837_p1 }
  0x3a   : > { %p835_p10 = pneg %p834_p5 }
  0x3c   : > { %p840_p12 = pnand %p839_p6, %p835_p10 }
  0x3e   : > { %843 = shalt.err (!%p840_p12)
}
  0x3f   : > { %s844_s6 = scalar_lea.vmem %s220_s10, 64  ;;  %s933_s28 = smov [#allocation2]  }
  0x40   : > { %p845_p7 = scmp.ne.s32.totalorder %s220_s10, %s844_s6  ;;  %s849_s7 = sshll.u32 %s933_s28, 4  ;;  %s850_s7 = int_to_ptr.vmem [resolvable:$false] %s849_s7 }
  0x41   : > { %s851_s9 = scalar_lea.vmem %s850_s7, 128  ;;  %p852_p13 = scmp.lt.s32.totalorder %s220_s10, %s850_s7 }
  0x42   : > { %p847_p9 = pnand %p845_p7, %p833_p0  ;;  %p853_p5 = scmp.lt.s32.totalorder %s851_s9, %s844_s6 }
  0x44   : > { %p848_p3 = pneg %p847_p9  ;;  %p854_p4 = por %p853_p5, %p852_p13 }
  0x46   : > { %p855_p8 = pnand %p854_p4, %p848_p3 }
  0x48   : > { %858 = shalt.err (!%p855_p8)
}
  0x49   : > { %714 = dma.hbm_to_vmem [thread:$0]  (!%p1064_p11), %s1062_s8, 64, %s220_s10, %s209_s12  }
  0x4a   : > { %p1171_p10 = scmp.ne.s32.totalorder %s1166_s26, 0 }
  0x4b   : > { %s1085_s13 = sand.u32 (!%p1171_p10), 1, %s919_s19   ;;  %p1172_p0 = scmp.ne.s32.totalorder (!%p1171_p10), %s1164_s24, 0 }
  0x4c   : > { %228 = sbr.rel (%p1171_p10) target bundleno = 529 (0x211), region = 40  ;;  %s608_s14 = sshll.u32 (!%p1171_p10), %s1085_s13, 2 }
  0x4d   : > { %s231_s16 = scalar_lea.sflag (!%p1171_p10), [#allocation3], %s1085_s13  ;;  %s1089_s17 = scalar_lea.vmem (!%p1171_p10), [#allocation2], %s608_s14 }
  0x51   : > { %902 = dma.done.wait (%p1172_p0), %s231_s16, 64  }
  0x52   : > { %904 = vsyncadd (%p1172_p0), %s231_s16, 4294967232  ;;  %p1173_p4 = scmp.eq.s32.totalorder %s988_s22, 0 }
  0x54   : > { %906 = dma.done.wait (%p1173_p4), [#allocation6], 2048   ;;  %p1174_p8 = pmov %p1173_p4 }
  0x55   : > { %v934_v0 = vmov 0.0   ;;  %vm935_vm0 = vmmov 0   ;;  %v763_v1 = vld [vmem:[#allocation5 + $0x38] sm:$0xff]   ;;  %v764_v2 = vld [vmem:[#allocation5 + $0x30] sm:$0xff]   ;;  %v765_v3 = vld [vmem:[#allocation5 + $0x28] sm:$0xff]   ;;  %s611_s8 = sshll.u32 %s1085_s13, 3 }
  0x56   : > { %908 = vsyncadd (%p1174_p8), [#allocation6], 4294965248  ;;  %652 = vmatprep.subr.bf16.mxu0 %v934_v0  ;;  %668 = vmatprep.mubr.msk.bf16.mxu0 %vm935_vm0, %v934_v0  ;;  %v771_v4 = vld [vmem:[#allocation7 + $0x38] sm:$0xff]   ;;  %v766_v5 = vld [vmem:[#allocation5 + $0x20] sm:$0xff]   ;;  %s631_s12 = sshll.u32 %s988_s22, 7  ;;  %s268_s30 = scalar_lea.vmem [#allocation8], %s611_s8 }
  0x57   : > { %672 = vmatprep.subr.bf16.mxu1 %v934_v0  ;;  %688 = vmatprep.mubr.msk.bf16.mxu1 %vm935_vm0, %v934_v0  ;;  %v772_v6 = vld [vmem:[#allocation7 + $0x30] sm:$0xff]   ;;  %v767_v7 = vld [vmem:[#allocation5 + $0x18] sm:$0xff]   ;;  %v773_v8 = vld [vmem:[#allocation7 + $0x28] sm:$0xff]   ;;  %s511_s29 = sshll.u32 %s268_s30, 4  ;;  %s1111_s7 = scalar_lea.hbm %s1159_s5, %s631_s12  ;;  %s1113_s29 = int_to_ptr.vmem [resolvable:$true] %s511_s29 }
  0x58   : > { %653 = vmatpush3.bf16.msra.mxu0 %v763_v1  ;;  %673 = vmatpush3.bf16.msra.mxu1 %v771_v4  ;;  %v768_v9 = vld [vmem:[#allocation5 + $0x10] sm:$0xff]   ;;  %v774_v10 = vld [vmem:[#allocation7 + $0x20] sm:$0xff]   ;;  %v769_v11 = vld [vmem:[#allocation5 + $0x8] sm:$0xff]   ;;  %s498_s9 = scalar_lea.sflag [#allocation4], %s1085_s13  ;;  %s859_s14 = scalar_lea.vmem %s1113_s29, 128 }
  0x59   : > { %654 = vmatprep.subr.bf16.mxu0 %v934_v0  ;;  %674 = vmatprep.subr.bf16.mxu1 %v934_v0  ;;  %v775_v12 = vld [vmem:[#allocation7 + $0x18] sm:$0xff]   ;;  %v770_v13 = vld [vmem:[#allocation5] sm:$0xff]   ;;  %v776_v14 = vld [vmem:[#allocation7 + $0x10] sm:$0xff]   ;;  %p860_p3 = scmp.ne.s32.totalorder %s1113_s29, %s859_s14  ;;  %p1175_p11 = scmp.ne.s32.totalorder %s1169_s23, 0 }
  0x5a   : > { %v270_v15 = vld [vmem:[%s1089_s17] sm:$0xf]  ;;  %v777_v16 = vld [vmem:[#allocation7 + $0x8] sm:$0xff]   ;;  %v778_v17 = vld [vmem:[#allocation7] sm:$0xff]   ;;  %s936_s22 = smov [#allocation8]  }
  0x5b   : > { %v612_v18 = vld [vmem:[%s1156_s2] ss:$0 sm:$0xff]  ;;  %p861_p1 = pnand %p860_p3, %p1175_p11  ;;  %s863_s16 = sshll.u32 %s936_s22, 4  ;;  %s864_s16 = int_to_ptr.vmem [resolvable:$false] %s863_s16 }
  0x5c   : > { %655 = vmatpush3.bf16.msra.mxu0 %v764_v2  ;;  %675 = vmatpush3.bf16.msra.mxu1 %v772_v6  ;;  %v621_v27 = vld [vmem:[%s1158_s4] ss:$0 sm:$0xff]  ;;  %s865_s17 = scalar_lea.vmem %s864_s16, 256  ;;  %p866_p6 = scmp.lt.s32.totalorder %s1113_s29, %s864_s16 }
  0x5d   : > { %656 = vmatprep.subr.bf16.mxu0 %v934_v0  ;;  %676 = vmatprep.subr.bf16.mxu1 %v934_v0  ;;  %p862_p2 = pneg %p861_p1  ;;  %p867_p12 = scmp.lt.s32.totalorder %s865_s17, %s859_s14 }
  0x5f   : > { %p868_p7 = por %p867_p12, %p866_p6 }
  0x60   : > { %657 = vmatpush3.bf16.msra.mxu0 %v765_v3  ;;  %677 = vmatpush3.bf16.msra.mxu1 %v773_v8 }
  0x61   : > { %658 = vmatprep.subr.bf16.mxu0 %v934_v0  ;;  %678 = vmatprep.subr.bf16.mxu1 %v934_v0  ;;  %p869_p9 = pnand %p868_p7, %p862_p2 }
  0x64   : > { %659 = vmatpush3.bf16.msra.mxu0 %v766_v5  ;;  %679 = vmatpush3.bf16.msra.mxu1 %v774_v10 }
  0x65   : > { %660 = vmatprep.subr.bf16.mxu0 %v934_v0  ;;  %680 = vmatprep.subr.bf16.mxu1 %v934_v0 }
  0x68   : > { %661 = vmatpush3.bf16.msra.mxu0 %v767_v7  ;;  %681 = vmatpush3.bf16.msra.mxu1 %v775_v12 }
  0x69   : > { %662 = vmatprep.subr.bf16.mxu0 %v934_v0  ;;  %682 = vmatprep.subr.bf16.mxu1 %v934_v0 }
  0x6c   : > { %663 = vmatpush3.bf16.msra.mxu0 %v768_v9  ;;  %683 = vmatpush3.bf16.msra.mxu1 %v776_v14 }
  0x6d   : > { %664 = vmatprep.subr.bf16.mxu0 %v934_v0  ;;  %684 = vmatprep.subr.bf16.mxu1 %v934_v0 }
  0x70   : > { %665 = vmatpush3.bf16.msra.mxu0 %v769_v11  ;;  %685 = vmatpush3.bf16.msra.mxu1 %v777_v16 }
  0x71   : > { %666 = vmatprep.subr.bf16.mxu0 %v934_v0  ;;  %686 = vmatprep.subr.bf16.mxu1 %v934_v0 }
  0x74   : > { %667 = vmatpush3.bf16.msra.mxu0 %v770_v13  ;;  %687 = vmatpush3.bf16.msra.mxu1 %v778_v17 }
  0x77   : > { %669 = vmatmul.mubr.bf16.vlgmr.msra.gmra.mxu0 %v270_v15 }
 0x137   : > { %v376_v19 = vpop.f32.mrf.mxu0 }
 0x138   : > { %v377_v20 = vadd.f32 %v612_v18, %v376_v19 }
 0x139   : > { %v670_v21 = vpop.f32.mrf.mxu0 }
 0x13a   : > { %v382_v22 = vmul.f32 0.01, %v377_v20 }
 0x13b   : > { %v379_v23 = vpop.f32.mrf.mxu0 }
 0x13c   : > { %v383_v24 = vmax.f32 %v377_v20, %v382_v22 }
 0x13d   : > { %v671_v25 = vpop.f32.mrf.mxu0 }
 0x13e   : > { %v384_v26 = vpack.c.bf16 %v383_v24, %v383_v24 }
 0x140   : > { %689 = vmatmul.mubr.bf16.vlgmr.msra.gmra.mxu1 %v384_v26 }
 0x200   : > { %v490_v28 = vpop.f32.mrf.mxu1 }
 0x201   : > { %v491_v29 = vadd.f32 %v621_v27, %v490_v28 }
 0x202   : > { %v690_v30 = vpop.f32.mrf.mxu1 }
 0x203   : > { %496 = vst [vmem:[%s268_s30] sm:$0xff] %v491_v29 }
 0x204   : > { %v493_v31 = vpop.f32.mrf.mxu1 }
 0x205   : > { %872 = shalt.err (!%p869_p9)
}
 0x206   : > { %s873_s24 = scalar_lea.hbm %s1111_s7, 128  ;;  %s877_s8 = scalar_lea.hbm %s1159_s5, 256 }
 0x207   : > { %p874_p13 = scmp.ne.s32.totalorder %s1111_s7, %s873_s24  ;;  %p878_p0 = scmp.lt.s32.totalorder %s1111_s7, %s1159_s5 }
 0x208   : > { %p879_p4 = scmp.lt.s32.totalorder %s877_s8, %s873_s24 }
 0x209   : > { %p875_p5 = pnand %p874_p13, %p1175_p11 }
 0x20a   : > { %p880_p8 = por %p879_p4, %p878_p0 }
 0x20b   : > { %p876_p10 = pneg %p875_p5 }
 0x20d   : > { %p881_p3 = pnand %p880_p8, %p876_p10 }
 0x20f   : > { %884 = shalt.err (!%p881_p3)
}
 0x210   : > { %702 = dma.vmem_to_hbm [thread:$0]  (%p1175_p11), %s1113_s29, 128, %s1111_s7, %s498_s9   ;;  %v691_v32 = vpop.f32.mrf.mxu1 }
 0x211 PF: > { %s523_s12 = sand.u32 1, %s915_s18   ;;  %p1176_p1 = scmp.ne.s32.totalorder %s1165_s25, 0 }
 0x212   : > { %p1177_p2 = scmp.ge.s32.totalorder %s927_s21, 2  ;;  %s524_s30 = scalar_lea.sflag [#allocation4], %s523_s12 }
 0x214   : > { %p716_p6 = pnand %p1177_p2, %p1176_p1 }
 0x216   : > { %p717_p12 = pneg %p716_p6 }
 0x218   : > { %910 = dma.done.wait (%p717_p12), %s524_s30, 128  }
 0x219   : > { %912 = vsyncadd (%p717_p12), %s524_s30, 4294967168  ;;  %p19_p7 = scmp.ge.s32.totalorder %s1039_s15, 4   ;;  %s1178_s18 = smov %s919_s19 }
 0x21a   : > { %s1179_s19 = smov %s923_s20  ;;  %s1180_s20 = smov %s1055_s27 }
 0x21b   : > { %s1181_s21 = smov %s1039_s15  ;;  %21 = sbr.rel (!%p19_p7) target bundleno = 6 (0x6), region = 93 }
 0x220   :  { %529 = vsyncpa [#allocation3], 1 }
 0x221   :  { %531 = vsyncpa [#allocation3 + $0x1], 1 }
 0x222   :  { %532 = vsyncpa [#allocation6], 1 }
 0x223   :  { %533 = vsyncpa [#allocation4], 1 }
 0x224   :  { %535 = vsyncpa [#allocation4 + $0x1], 1 }

</bundles_post_ra>
